<compile_context>
chip_gen: v7x
topology: tpu7x:2x2x1
jax: 0.10.0
libtpu: 0.0.40
codegen_flags: <defaults>
</compile_context>

<pallas_src>
import functools

import jax
import jax.numpy as jnp
from jax.experimental import pallas as pl
from jax.experimental.pallas import tpu as pltpu


def _adapter_kernel(x_ref, w1_ref, b1_ref, w2_ref, b2_ref, o_ref, acc_ref, h_ref, *,
                    use_cross_entropy, fused, w1_resident):
    j = pl.program_id(1)
    k = pl.program_id(2)
    nk = pl.num_programs(2)

    # Fold b2 into the accumulator init (no extra epilogue add, no re-broadcast per k-step).
    @pl.when(k == 0)
    def _init():
        acc_ref[...] = jnp.broadcast_to(b2_ref[...], acc_ref.shape)

    # First linear (k-th hidden slice) + bias + tanh: computed only for the first N tile and
    # cached in VMEM; every other N tile reuses h_ref[k].
    @pl.when(j == 0)
    def _compute_h():
        if w1_resident:
            w1_blk = w1_ref[k]        # (in_dim, TK) slice of the resident, K-major weight
            b1_blk = b1_ref[k]        # (1, TK)
        else:
            w1_blk = w1_ref[...]      # streamed per-K block
            b1_blk = b1_ref[...]
        h = jnp.dot(x_ref[...], w1_blk, preferred_element_type=jnp.float32)
        h_ref[k] = jnp.tanh(h + b1_blk).astype(h_ref.dtype)

    # Second linear: accumulate this K-slice's contribution into the resident f32 accumulator.
    acc_ref[...] += jnp.dot(h_ref[k], w2_ref[...], preferred_element_type=jnp.float32)

    @pl.when(k == nk - 1)
    def _finalize():
        y = acc_ref[...]
        if use_cross_entropy:
            # Softmax over the fused (n_tokens*out_dim) axis. TN == Fp in this mode, so the
            # whole (padded) row lives in this block; padded columns are masked to -inf so they
            # contribute 0 to the denominator.
            if y.shape[-1] > fused:
                col = jax.lax.broadcasted_iota(jnp.int32, y.shape, 1)
                y = jnp.where(col < fused, y, -jnp.inf)
            m = jnp.max(y, axis=-1, keepdims=True)
            e = jnp.exp(y - m)
            # TODO(synk): approx reciprocal (~1e-3 rel err) is fine for inference; use exact
            # division (or one Newton step) if this feeds a training loss.
            y = e * pl.reciprocal(jnp.sum(e, axis=-1, keepdims=True), approx=True)
        o_ref[...] = y.astype(o_ref.dtype)


def _round_up(x, m):
    return (x + m - 1) // m * m


def _pad_axis(a, axis, target):
    pad = target - a.shape[axis]
    if pad == 0:
        return a
    widths = [(0, 0)] * a.ndim
    widths[axis] = (0, pad)
    return jnp.pad(a, widths)


def _vmem_capacity_bytes():
    """Generation-aware VMEM size (128 MiB v5e/v6e, 64 MiB per TC v7x); safe fallback 64 MiB."""
    try:
        cap = getattr(pltpu.get_tpu_info(), "vmem_capacity_bytes", None)
        if cap:
            return int(cap)
    except Exception:
        pass
    return 64 * 2 ** 20


def image_adapter_forward(x, w1, b1, w2, b2, *, n_tokens, out_dim,
                          use_cross_entropy=False, compute_dtype=jnp.bfloat16,
                          out_dtype=None, tile_m=128, tile_n=2048, tile_k=1024):
    """Pallas TPU implementation of ImageAdapter.forward.

    x  : (B, in_dim)
    w1 : (in_dim, hidden)            (transposed vs. torch Linear.weight)
    b1 : (hidden,) or (1, hidden)
    w2 : (hidden, n_tokens*out_dim)  (transposed vs. torch Linear.weight)
    b2 : (n_tokens*out_dim,) or (1, n_tokens*out_dim)
    returns (B, n_tokens, out_dim) in out_dtype (defaults to x.dtype).
    """
    B, in_dim = x.shape
    hidden = w1.shape[1]
    fused = n_tokens * out_dim
    assert w2.shape == (hidden, fused), w2.shape

    out_dtype = x.dtype if out_dtype is None else out_dtype

    # Biases stay f32 (folded into the f32 accumulator / f32 tanh epilogue).
    b1 = jnp.asarray(b1, jnp.float32).reshape(1, hidden)
    b2 = jnp.asarray(b2, jnp.float32).reshape(1, fused)

    # Streamed operands in the (narrow) compute dtype; MXU accumulates in f32.
    x = x.astype(compute_dtype)
    w1 = w1.astype(compute_dtype)
    w2 = w2.astype(compute_dtype)

    in_bytes = jnp.dtype(compute_dtype).itemsize
    out_bytes = jnp.dtype(out_dtype).itemsize

    # ---- Tile selection ----
    # M: pad batch to a sublane multiple (>=8) so output stores are unmasked.
    TM = min(tile_m, _round_up(B, 8))
    Bp = _round_up(B, TM)
    # K (hidden): full hidden if small, else a 128/256-aligned tile.
    if hidden <= tile_k:
        TK, Hp = hidden, hidden
    else:
        assert tile_k % 128 == 0
        TK, Hp = tile_k, _round_up(hidden, tile_k)
    # N (fused): softmax needs the whole (padded) row in one block; otherwise tile and stream.
    # Fp is always a 128 multiple so output stores are lane-dense (full vst, not vst.msk).
    if use_cross_entropy or fused <= tile_n:
        Fp = _round_up(fused, 128)
        TN = Fp
    else:
        assert tile_n % 128 == 0
        TN = tile_n
        Fp = _round_up(fused, TN)

    # w1/b1 fully VMEM-resident (loaded once) when small enough; else streamed per K slice.
    w1_resident = in_dim * Hp * in_bytes <= 16 * 2 ** 20

    vmem_cap = _vmem_capacity_bytes()
    usable = vmem_cap * 3 // 4          # ~96 MiB on v5e/v6e, ~48 MiB on v7x

    def vmem_estimate(tm, tn, tk, hp):
        est = 2 * tm * in_dim * in_bytes                        # x tile (double-buffered)
        if w1_resident:
            est += 2 * in_dim * hp * in_bytes + 2 * hp * 4      # resident w1 + b1
        else:
            est += 2 * in_dim * tk * in_bytes + 2 * tk * 4      # streamed w1 + b1
        est += 2 * tk * tn * in_bytes                           # w2 tile (double-buffered)
        est += 2 * tn * 4                                       # b2 tile
        est += 2 * tm * tn * out_bytes                          # output tile
        est += tm * tn * 4                                      # f32 accumulator scratch
        est += tm * hp * in_bytes                               # cached tanh activations
        return est

    # Shrink tiles if the working set exceeds the generation-specific VMEM budget (v7x = 64 MiB).
    for _ in range(8):
        if vmem_estimate(TM, TN, TK, Hp) <= usable:
            break
        if (not use_cross_entropy) and TN > 256 and TN % 256 == 0:
            TN //= 2
            Fp = _round_up(fused, TN)
        elif TK > 256 and TK % 256 == 0 and TK < hidden:
            TK //= 2
            Hp = _round_up(hidden, TK)
        else:
            break

    # Zero-padding is semantics-preserving: padded hidden cols give tanh(0)=0 and hit zero rows
    # of w2; padded batch rows / fused cols are masked (softmax) and sliced away below.
    xp = _pad_axis(x, 0, Bp)
    w1p = _pad_axis(w1, 1, Hp)
    b1p = _pad_axis(b1, 1, Hp)
    w2p = _pad_axis(_pad_axis(w2, 0, Hp), 1, Fp)
    b2p = _pad_axis(b2, 1, Fp)

    nkk = Hp // TK
    grid = (Bp // TM, Fp // TN, nkk)

    if w1_resident:
        # Store K-major so the kernel slices with a cheap leading-dim dynamic index w1_ref[k].
        w1_in = w1p.reshape(in_dim, nkk, TK).transpose(1, 0, 2)     # (nkk, in_dim, TK)
        b1_in = b1p.reshape(1, nkk, TK).transpose(1, 0, 2)          # (nkk, 1, TK)
        w1_spec = pl.BlockSpec((nkk, in_dim, TK), lambda i, j, k: (0, 0, 0))
        b1_spec = pl.BlockSpec((nkk, 1, TK), lambda i, j, k: (0, 0, 0))
    else:
        w1_in, b1_in = w1p, b1p
        w1_spec = pl.BlockSpec((in_dim, TK), lambda i, j, k: (0, k))
        b1_spec = pl.BlockSpec((1, TK), lambda i, j, k: (0, k))

    est = vmem_estimate(TM, TN, TK, Hp)
    vmem_limit = int(min(max(2 * est, 32 * 2 ** 20),
                         max(usable, est + (8 * 2 ** 20)),
                         vmem_cap * 9 // 10))

    cost = pl.CostEstimate(
        flops=int(2 * Bp * in_dim * Hp + 2 * Bp * Hp * Fp),
        transcendentals=int(Bp * Hp + (Bp * Fp if use_cross_entropy else 0)),
        bytes_accessed=int(xp.size * in_bytes + w1p.size * in_bytes + w2p.size * in_bytes
                           + b1p.size * 4 + b2p.size * 4 + Bp * Fp * out_bytes),
    )

    kernel = functools.partial(_adapter_kernel, use_cross_entropy=use_cross_entropy,
                               fused=fused, w1_resident=w1_resident)

    out = pl.pallas_call(
        kernel,
        out_shape=jax.ShapeDtypeStruct((Bp, Fp), out_dtype),
        grid_spec=pltpu.PrefetchScalarGridSpec(
            num_scalar_prefetch=0,
            grid=grid,
            in_specs=[
                pl.BlockSpec((TM, in_dim), lambda i, j, k: (i, 0)),   # x
                w1_spec,                                              # w1 (resident or streamed)
                b1_spec,                                              # b1
                # TODO(synk): try pipeline_mode=pl.Buffered(3) on the w2 spec in the tiny-batch
                # regime (re-check the v7x 64 MiB budget before enabling).
                pl.BlockSpec((TK, TN), lambda i, j, k: (k, j)),       # w2 (streamed every step)
                pl.BlockSpec((1, TN), lambda i, j, k: (0, j)),        # b2
            ],
            out_specs=pl.BlockSpec((TM, TN), lambda i, j, k: (i, j)),
            scratch_shapes=[
                pltpu.VMEM((TM, TN), jnp.float32),          # f32 accumulator (b2 folded in)
                pltpu.VMEM((nkk, TM, TK), compute_dtype),   # cached tanh(x @ w1 + b1)
            ],
        ),
        # The cached first-layer activations create a cross-N-tile dependency, so only the batch
        # axis is megacore-"parallel"; N and K stay "arbitrary".
        # TODO(synk): on v7x with grid[0]==1 (tiny batch) one TensorCore idles; a cross-core
        # K-split with partial-sum reduction would recover it.
        compiler_params=pltpu.CompilerParams(
            dimension_semantics=("parallel", "arbitrary", "arbitrary"),
            vmem_limit_bytes=vmem_limit,
        ),
        cost_estimate=cost,
    )(xp, w1_in, b1_in, w2p, b2p)

    # Same as torch `.view(x.size(0), n_tokens, out_dim)` (after dropping padding).
    return out[:B, :fused].reshape(B, n_tokens, out_dim)


def _init_params(key, in_dim, hidden, n_tokens, out_dim):
    """Deterministic synthetic params matching nn.Linear shapes (stored transposed)."""
    k1, k2, k3, k4 = jax.random.split(key, 4)
    fused = n_tokens * out_dim
    s1 = 1.0 / jnp.sqrt(jnp.float32(in_dim))
    s2 = 1.0 / jnp.sqrt(jnp.float32(hidden))
    w1 = jax.random.uniform(k1, (in_dim, hidden), jnp.float32, -s1, s1)
    b1 = jax.random.uniform(k2, (1, hidden), jnp.float32, -s1, s1)
    w2 = jax.random.uniform(k3, (hidden, fused), jnp.float32, -s2, s2)
    b2 = jax.random.uniform(k4, (1, fused), jnp.float32, -s2, s2)
    return w1, b1, w2, b2


def _reference_forward(x, w1, b1, w2, b2, n_tokens, out_dim, use_cross_entropy):
    # Mirrors the kernel's dtype handling: f32 math, h cast to the weight dtype before matmul 2.
    h = jnp.tanh(jnp.dot(x.astype(jnp.float32), w1.astype(jnp.float32))
                 + b1.reshape(1, -1).astype(jnp.float32))
    h = h.astype(w2.dtype)
    y = (jnp.dot(h.astype(jnp.float32), w2.astype(jnp.float32))
         + b2.reshape(1, -1).astype(jnp.float32))
    if use_cross_entropy:
        y = jax.nn.softmax(y, axis=-1)
    return y.reshape(x.shape[0], n_tokens, out_dim)


def _run_case(key, B, in_dim, hidden, n_tokens, out_dim, *, use_cross_entropy,
              compute_dtype, atol, rtol, **tile_kw):
    kx, kp = jax.random.split(key)
    x = jax.random.normal(kx, (B, in_dim), jnp.float32)
    w1, b1, w2, b2 = _init_params(kp, in_dim, hidden, n_tokens, out_dim)
    xd = x.astype(compute_dtype)
    w1d = w1.astype(compute_dtype)
    w2d = w2.astype(compute_dtype)

    out = image_adapter_forward(
        xd, w1d, b1, w2d, b2, n_tokens=n_tokens, out_dim=out_dim,
        use_cross_entropy=use_cross_entropy, compute_dtype=compute_dtype, **tile_kw)
    out = jax.block_until_ready(out)

    ref = _reference_forward(xd, w1d, b1, w2d, b2, n_tokens, out_dim, use_cross_entropy)
    assert out.shape == (B, n_tokens, out_dim), out.shape
    out_f32 = out.astype(jnp.float32)
    err = float(jnp.max(jnp.abs(out_f32 - ref)))
    assert jnp.allclose(out_f32, ref, atol=atol, rtol=rtol), err
    return err


if __name__ == "__main__":
    key = jax.random.PRNGKey(0)
    k1, k2, k3 = jax.random.split(key, 3)

    # 1) Small single-block case (f32, no softmax) — tight tolerance.
    _run_case(k1, B=2, in_dim=32, hidden=32, n_tokens=8, out_dim=32,
              use_cross_entropy=False, compute_dtype=jnp.float32,
              atol=1e-5, rtol=1e-5)

    # 2) Multi-tile case exercising the (M, N, K) grid, accumulator and the cross-N h cache.
    _run_case(k2, B=2, in_dim=32, hidden=256, n_tokens=8, out_dim=32,
              use_cross_entropy=False, compute_dtype=jnp.float32,
              tile_n=128, tile_k=128, atol=1e-4, rtol=1e-4)

    # 3) bf16 weights + softmax path (fused axis kept whole, K tiled, approx reciprocal,
    #    bf16 output writeback).
    _run_case(k3, B=2, in_dim=32, hidden=256, n_tokens=8, out_dim=32,
              use_cross_entropy=True, compute_dtype=jnp.bfloat16,
              tile_k=128, atol=2e-3, rtol=5e-2)

    print("KERNEL_OK")
</pallas_src>

<mosaic_0001>
module attributes {stable_mosaic.version = 11 : i64} {
  func.func @_adapter_kernel(%arg0: i32, %arg1: i32, %arg2: i32, %arg3: memref<8x32xf32, #tpu.memory_space<vmem>>, %arg4: memref<1x32x32xf32, #tpu.memory_space<vmem>>, %arg5: memref<1x1x32xf32, #tpu.memory_space<vmem>>, %arg6: memref<32x256xf32, #tpu.memory_space<vmem>>, %arg7: memref<1x256xf32, #tpu.memory_space<vmem>>, %arg8: memref<8x256xf32, #tpu.memory_space<vmem>>, %arg9: memref<8x256xf32, #tpu.memory_space<vmem>>, %arg10: memref<1x8x32xf32, #tpu.memory_space<vmem>>) attributes {dimension_semantics = [#tpu.dimension_semantics<parallel>, #tpu.dimension_semantics<arbitrary>, #tpu.dimension_semantics<arbitrary>], iteration_bounds = array<i64: 1, 1, 1>, scalar_prefetch = 0 : i64, scratch_operands = 2 : i64, tpu.core_type = #tpu.core_type<tc>, window_params = [{transform_indices = @transform_0, window_bounds = array<i64: 8, 32>}, {pipeline_mode = #tpu.pipeline_mode<synchronous>, transform_indices = @transform_1, window_bounds = array<i64: 1, 32, 32>}, {pipeline_mode = #tpu.pipeline_mode<synchronous>, transform_indices = @transform_2, window_bounds = array<i64: 1, 1, 32>}, {transform_indices = @transform_3, window_bounds = array<i64: 32, 256>}, {transform_indices = @transform_4, window_bounds = array<i64: 1, 256>}, {transform_indices = @transform_5, window_bounds = array<i64: 8, 256>}]} {
    %c0_i32 = arith.constant 0 : i32
    %0 = arith.cmpi eq, %arg2, %c0_i32 : i32
    %1 = arith.extui %0 : i1 to i32
    %c0_i32_0 = arith.constant 0 : i32
    %2 = arith.cmpi ne, %1, %c0_i32_0 : i32
    scf.if %2 {
      %c0_12 = arith.constant 0 : index
      %c0_13 = arith.constant 0 : index
      %17 = vector.load %arg7[%c0_12, %c0_13] : memref<1x256xf32, #tpu.memory_space<vmem>>, vector<1x256xf32>
      %18 = vector.shape_cast %17 : vector<1x256xf32> to vector<1x256xf32>
      %19 = vector.broadcast %18 : vector<1x256xf32> to vector<8x256xf32>
      %c0_14 = arith.constant 0 : index
      %c0_15 = arith.constant 0 : index
      %20 = vector.load %arg9[%c0_14, %c0_15] : memref<8x256xf32, #tpu.memory_space<vmem>>, vector<8x256xf32>
      tpu.vector_store %arg9[%c0_14, %c0_15], %19 {strides = array<i32>} : memref<8x256xf32, #tpu.memory_space<vmem>>, vector<8x256xf32>,
    } else {
    }
    %c0_i32_1 = arith.constant 0 : i32
    %3 = arith.cmpi eq, %arg1, %c0_i32_1 : i32
    %4 = arith.extui %3 : i1 to i32
    %c0_i32_2 = arith.constant 0 : i32
    %5 = arith.cmpi ne, %4, %c0_i32_2 : i32
    scf.if %5 {
      %17 = arith.index_cast %arg2 : i32 to index
      %c0_12 = arith.constant 0 : index
      %c0_13 = arith.constant 0 : index
      %18 = vector.load %arg4[%17, %c0_12, %c0_13] : memref<1x32x32xf32, #tpu.memory_space<vmem>>, vector<1x32x32xf32>
      %19 = vector.shape_cast %18 : vector<1x32x32xf32> to vector<32x32xf32>
      %20 = arith.index_cast %arg2 : i32 to index
      %c0_14 = arith.constant 0 : index
      %c0_15 = arith.constant 0 : index
      %21 = vector.load %arg5[%20, %c0_14, %c0_15] : memref<1x1x32xf32, #tpu.memory_space<vmem>>, vector<1x1x32xf32>
      %22 = vector.shape_cast %21 : vector<1x1x32xf32> to vector<1x32xf32>
      %c0_16 = arith.constant 0 : index
      %c0_17 = arith.constant 0 : index
      %23 = vector.load %arg3[%c0_16, %c0_17] : memref<8x32xf32, #tpu.memory_space<vmem>>, vector<8x32xf32>
      %cst_18 = arith.constant dense<0.000000e+00> : vector<8x32xf32>
      %24 = tpu.matmul %23, %19, %cst_18 {dimension_numbers = #tpu.dot_dimension_numbers<[1], [0], [0], [1], [0, 0, 1, 1], [], []>} : vector<8x32xf32>, vector<32x32xf32>, vector<8x32xf32> -> vector<8x32xf32>
      %25 = vector.broadcast %22 : vector<1x32xf32> to vector<8x32xf32>
      %26 = arith.addf %24, %25 : vector<8x32xf32>
      %27 = math.tanh %26 : vector<8x32xf32>
      %28 = arith.index_cast %arg2 : i32 to index
      %c0_19 = arith.constant 0 : index
      %c0_20 = arith.constant 0 : index
      %29 = vector.load %arg10[%28, %c0_19, %c0_20] : memref<1x8x32xf32, #tpu.memory_space<vmem>>, vector<1x8x32xf32>
      %30 = vector.shape_cast %29 : vector<1x8x32xf32> to vector<8x32xf32>
      %31 = vector.shape_cast %27 : vector<8x32xf32> to vector<1x8x32xf32>
      tpu.vector_store %arg10[%28, %c0_19, %c0_20], %31 {strides = array<i32>} : memref<1x8x32xf32, #tpu.memory_space<vmem>>, vector<1x8x32xf32>,
    } else {
    }
    %c0 = arith.constant 0 : index
    %c0_3 = arith.constant 0 : index
    %6 = vector.load %arg9[%c0, %c0_3] : memref<8x256xf32, #tpu.memory_space<vmem>>, vector<8x256xf32>
    %7 = arith.index_cast %arg2 : i32 to index
    %c0_4 = arith.constant 0 : index
    %c0_5 = arith.constant 0 : index
    %8 = vector.load %arg10[%7, %c0_4, %c0_5] : memref<1x8x32xf32, #tpu.memory_space<vmem>>, vector<1x8x32xf32>
    %9 = vector.shape_cast %8 : vector<1x8x32xf32> to vector<8x32xf32>
    %c0_6 = arith.constant 0 : index
    %c0_7 = arith.constant 0 : index
    %10 = vector.load %arg6[%c0_6, %c0_7] : memref<32x256xf32, #tpu.memory_space<vmem>>, vector<32x256xf32>
    %cst = arith.constant dense<0.000000e+00> : vector<8x256xf32>
    %11 = tpu.matmul %9, %10, %cst {dimension_numbers = #tpu.dot_dimension_numbers<[1], [0], [0], [1], [0, 0, 1, 1], [], []>} : vector<8x32xf32>, vector<32x256xf32>, vector<8x256xf32> -> vector<8x256xf32>
    %12 = arith.addf %6, %11 : vector<8x256xf32>
    %c0_8 = arith.constant 0 : index
    %c0_9 = arith.constant 0 : index
    %13 = vector.load %arg9[%c0_8, %c0_9] : memref<8x256xf32, #tpu.memory_space<vmem>>, vector<8x256xf32>
    tpu.vector_store %arg9[%c0_8, %c0_9], %12 {strides = array<i32>} : memref<8x256xf32, #tpu.memory_space<vmem>>, vector<8x256xf32>,
    %c0_i32_10 = arith.constant 0 : i32
    %14 = arith.cmpi eq, %arg2, %c0_i32_10 : i32
    %15 = arith.extui %14 : i1 to i32
    %c0_i32_11 = arith.constant 0 : i32
    %16 = arith.cmpi ne, %15, %c0_i32_11 : i32
    scf.if %16 {
      %c0_12 = arith.constant 0 : index
      %c0_13 = arith.constant 0 : index
      %17 = vector.load %arg9[%c0_12, %c0_13] : memref<8x256xf32, #tpu.memory_space<vmem>>, vector<8x256xf32>
      %c0_14 = arith.constant 0 : index
      %c0_15 = arith.constant 0 : index
      %18 = vector.load %arg8[%c0_14, %c0_15] : memref<8x256xf32, #tpu.memory_space<vmem>>, vector<8x256xf32>
      tpu.vector_store %arg8[%c0_14, %c0_15], %17 {strides = array<i32>} : memref<8x256xf32, #tpu.memory_space<vmem>>, vector<8x256xf32>,
    } else {
    }
    return
  }
  func.func @transform_0(%arg0: i32, %arg1: i32, %arg2: i32) -> (i32, i32) {
    %c0_i32 = arith.constant 0 : i32
    %c0_i32_0 = arith.constant 0 : i32
    return %arg0, %c0_i32 : i32, i32
  }
  func.func @transform_1(%arg0: i32, %arg1: i32, %arg2: i32) -> (i32, i32, i32) {
    %c0_i32 = arith.constant 0 : i32
    %c0_i32_0 = arith.constant 0 : i32
    %c0_i32_1 = arith.constant 0 : i32
    %c0_i32_2 = arith.constant 0 : i32
    return %c0_i32, %c0_i32_0, %c0_i32_1 : i32, i32, i32
  }
  func.func @transform_2(%arg0: i32, %arg1: i32, %arg2: i32) -> (i32, i32, i32) {
    %c0_i32 = arith.constant 0 : i32
    %c0_i32_0 = arith.constant 0 : i32
    %c0_i32_1 = arith.constant 0 : i32
    %c0_i32_2 = arith.constant 0 : i32
    return %c0_i32, %c0_i32_0, %c0_i32_1 : i32, i32, i32
  }
  func.func @transform_3(%arg0: i32, %arg1: i32, %arg2: i32) -> (i32, i32) {
    %c0_i32 = arith.constant 0 : i32
    return %arg2, %arg1 : i32, i32
  }
  func.func @transform_4(%arg0: i32, %arg1: i32, %arg2: i32) -> (i32, i32) {
    %c0_i32 = arith.constant 0 : i32
    %c0_i32_0 = arith.constant 0 : i32
    return %c0_i32, %arg1 : i32, i32
  }
  func.func @transform_5(%arg0: i32, %arg1: i32, %arg2: i32) -> (i32, i32) {
    %c0_i32 = arith.constant 0 : i32
    return %arg0, %arg1 : i32, i32
  }
}

</mosaic_0001>

<bundles_post_ra>
// kernel: tpu_custom_call.1
= control target key start
LH: loop header
LB: loop body
LE: loop exit
PB: predicated region body
PF: predicated region fallthrough
CT: control target
= control target key end

     0   :  { %10 = vsyncpa [#allocation5], 0  ;;  %s527_s0 = inlined_call_operand.hbm [shape: f32[8,32], index: 0, kind: input, shape index: {}]   ;;  %s528_s1 = inlined_call_operand.hbm [shape: f32[1,32,32], index: 1, kind: input, shape index: {}]   ;;  %s529_s2 = inlined_call_operand.vmem [shape: f32[1,1,32], index: 2, kind: input, shape index: {}]   ;;  %s530_s3 = inlined_call_operand.hbm [shape: f32[32,256], index: 3, kind: input, shape index: {}]   ;;  %s531_s4 = inlined_call_operand.vmem [shape: f32[1,256], index: 4, kind: input, shape index: {}]   ;;  %s532_s5 = inlined_call_operand.hbm [shape: f32[8,256], index: 5, kind: output, shape index: {}]  }
   0x1   :  { %11 = vsyncpa [#allocation8], 0 }
   0x2   :  { %12 = vsyncpa [#allocation6], 0  ;;  %s429_s18 = smov [#allocation7]   ;;  %s335_s22 = scalar_lea.hbm %s528_s1, 512 }
   0x3   :  { %s28_s19 = sshll.u32 %s429_s18, 4  ;;  %p336_p0 = scmp.ne.s32.totalorder %s528_s1, %s335_s22  ;;  %s29_s19 = int_to_ptr.vmem [resolvable:$true] %s28_s19 }
   0x4   :  { %p339_p1 = scmp.lt.u32.totalorder %s335_s22, %s528_s1 }
   0x6   :  { %p341_p2 = pnand %p339_p1, %p336_p0 }
   0x8   :  { %344 = shalt.err (!%p341_p2)
}
   0x9   :  { %s345_s27 = scalar_lea.vmem %s29_s19, 512  ;;  %p350_p4 = scmp.lt.s32.totalorder %s29_s19, %s29_s19 }
   0xa   :  { %p346_p3 = scmp.ne.s32.totalorder %s29_s19, %s345_s27  ;;  %p351_p5 = scmp.lt.s32.totalorder %s345_s27, %s345_s27 }
   0xc   :  { %p352_p6 = por %p351_p5, %p350_p4 }
   0xe   :  { %p353_p7 = pnand %p352_p6, %p346_p3 }
  0x10   :  { %356 = shalt.err (!%p353_p7)
}
  0x11   :  { %s430_s28 = smov 128   ;;  %s431_s29 = smov 8  }
  0x12   :  { %34 = dma.hbm_to_vmem [thread:$0]  %s528_s1, 512, %s29_s19, [#allocation8], %s430_s28, %s430_s28, %s431_s29  }
  0x13   :  { %s432_s7 = smov [#allocation4]   ;;  %s433_s9 = smov [#allocation9]  }
  0x14   :  { %s19_s8 = sshll.u32 %s432_s7, 4  ;;  %s42_s10 = sshll.u32 %s433_s9, 4  ;;  %s20_s8 = int_to_ptr.vmem [resolvable:$true] %s19_s8  ;;  %s43_s10 = int_to_ptr.vmem [resolvable:$true] %s42_s10 }
  0x15   :  { %s357_s13 = scalar_lea.hbm %s527_s0, 128 }
  0x16   :  { %p358_p8 = scmp.ne.s32.totalorder %s527_s0, %s357_s13  ;;  %p361_p9 = scmp.lt.u32.totalorder %s357_s13, %s527_s0 }
  0x18   :  { %p363_p10 = pnand %p361_p9, %p358_p8 }
  0x1a   :  { %366 = shalt.err (!%p363_p10)
}
  0x1b   :  { %s367_s1 = scalar_lea.vmem %s20_s8, 128  ;;  %p372_p12 = scmp.lt.s32.totalorder %s20_s8, %s20_s8 }
  0x1c   :  { %p368_p11 = scmp.ne.s32.totalorder %s20_s8, %s367_s1  ;;  %p373_p13 = scmp.lt.s32.totalorder %s367_s1, %s367_s1 }
  0x1e   :  { %p374_p0 = por %p373_p13, %p372_p12 }
  0x20   :  { %p375_p1 = pnand %p374_p0, %p368_p11 }
  0x22   :  { %378 = shalt.err (!%p375_p1)
}
  0x23   :  { %22 = dma.hbm_to_vmem [thread:$0]  %s527_s0, 128, %s20_s8, [#allocation5]  }
  0x24   :  { %s379_s22 = scalar_lea.hbm %s530_s3, 1024 }
  0x25   :  { %p380_p2 = scmp.ne.s32.totalorder %s530_s3, %s379_s22  ;;  %p383_p3 = scmp.lt.u32.totalorder %s379_s22, %s530_s3 }
  0x27   :  { %p385_p4 = pnand %p383_p3, %p380_p2 }
  0x29   :  { %388 = shalt.err (!%p385_p4)
}
  0x2a   :  { %s389_s27 = scalar_lea.vmem %s43_s10, 1024  ;;  %p394_p6 = scmp.lt.s32.totalorder %s43_s10, %s43_s10 }
  0x2b   :  { %p390_p5 = scmp.ne.s32.totalorder %s43_s10, %s389_s27  ;;  %p395_p7 = scmp.lt.s32.totalorder %s389_s27, %s389_s27 }
  0x2d   :  { %p396_p8 = por %p395_p7, %p394_p6 }
  0x2f   :  { %p397_p9 = pnand %p396_p8, %p390_p5 }
  0x31   :  { %400 = shalt.err (!%p397_p9)
}
  0x32   :  { %s434_s0 = smov 256   ;;  %s435_s28 = smov 16  }
  0x33   :  { %48 = dma.hbm_to_vmem [thread:$0]  %s530_s3, 1024, %s43_s10, [#allocation8], %s434_s0, %s434_s0, %s435_s28  }
  0x34   :  { %423 = dma.done.wait [#allocation5], 128  }
  0x35   :  { %424 = vsyncadd [#allocation5], 4294967168 }
  0x36   :  { %425 = dma.done.wait [#allocation8], 1536  }
  0x37   :  { %426 = vsyncadd [#allocation8], 4294965760  ;;  %v436_v0 = vmov 0.0|0.0   ;;  %vm437_vm0 = vmmov 0   ;;  %v438_v1 = vmov 0.0   ;;  %v84_v2 = vld [vmem:[#allocation7] sm:$0xff]  ;;  %v66_v27 = vlaneseq }
  0x38   :  { %308 = vmatprep.subr.bf16.mxu0 %v436_v0  ;;  %305 = vmatprep.mubr.msk.f32.mxu0 %vm437_vm0, %v438_v1  ;;  %v85_v3 = vld [vmem:[#allocation7 + $0x8] sm:$0xff]  ;;  %v86_v4 = vld [vmem:[#allocation7 + $0x10] sm:$0xff]  ;;  %v87_v6 = vld [vmem:[#allocation7 + $0x18] sm:$0xff]  ;;  %vm96_vm1 = vcmask 261120  }
  0x39   :  { %255 = vmatprep.mubr.f32.mxu1 %v438_v1  ;;  %v309_v5 = vpack.c.bf16 %v85_v3, %v84_v2  ;;  %v312_v7 = vpack.c.bf16 %v87_v6, %v86_v4  ;;  %v89_v8 = vld [vmem:[#allocation4] sm:$0xff]  ;;  %v180_v9 = vld [vmem:[#allocation9 + $0x8] sm:$0xff]  ;;  %v179_v12 = vld [vmem:[#allocation9] sm:$0xff]  ;;  %v67_v28 = vshrl.u32 %v66_v27, 7 }
  0x3a   :  { %v182_v10 = vld [vmem:[#allocation9 + $0x18] sm:$0xff]  ;;  %v181_v13 = vld [vmem:[#allocation9 + $0x10] sm:$0xff]  ;;  %v184_v15 = vld [vmem:[#allocation9 + $0x28] sm:$0xff] }
  0x3b   :  { %310 = vmatpush3.bf16.msra.mxu0 %v309_v5  ;;  %v314_v11 = vpack.c.bf16 %v182_v10, %v180_v9  ;;  %v316_v14 = vpack.c.bf16 %v181_v13, %v179_v12  ;;  %v186_v16 = vld [vmem:[#allocation9 + $0x38] sm:$0xff]  ;;  %v183_v17 = vld [vmem:[#allocation9 + $0x20] sm:$0xff]  ;;  %v185_v19 = vld [vmem:[#allocation9 + $0x30] sm:$0xff]  ;;  %v68_v29 = vsub.s32 0, %v67_v28  ;;  %v72_v31 = vsub.s32 1, %v67_v28 }
  0x3c   :  { %311 = vmatprep.subr.bf16.mxu0 %v436_v0  ;;  %v318_v18 = vpack.c.bf16 %v186_v16, %v184_v15  ;;  %v320_v20 = vpack.c.bf16 %v185_v19, %v183_v17  ;;  %v289_v21 = vld [vmem:[%s529_s2] ss:$0 sm:$0xff]  ;;  %s439_s2 = smov [#allocation10]  }
  0x3d   :  { %315 = vmatprep.subr.bf16.mxu1 %v314_v11  ;;  %v64_v30 = vld [vmem:[%s531_s4] sm:$0x3]  ;;  %s279_s9 = sshll.u32 %s439_s2, 4  ;;  %s280_s9 = int_to_ptr.vmem [resolvable:$true] %s279_s9 }
  0x3e   :  { %317 = vmatpush1.bf16.msra.mxu1 %v316_v14  ;;  %v69_v32 = vrot.slane %v64_v30, %v68_v29  ;;  %v73_v33 = vrot.slane %v64_v30, %v72_v31  ;;  %s401_s10 = scalar_lea.vmem %s280_s9, 256  ;;  %p406_p11 = scmp.lt.s32.totalorder %s280_s9, %s280_s9 }
  0x3f   :  { %313 = vmatpush3.bf16.msra.mxu0 %v312_v7  ;;  %319 = vmatprep.subr.bf16.mxu1 %v318_v18  ;;  %p402_p10 = scmp.ne.s32.totalorder %s280_s9, %s401_s10  ;;  %p407_p12 = scmp.lt.s32.totalorder %s401_s10, %s401_s10 }
  0x41   :  { %p408_p13 = por %p407_p12, %p406_p11 }
  0x42   :  { %306 = vmatmul.mubr.msk.f32.vlgmr.msra.gmra.mrb[0].mxu0 %vm96_vm1, %v89_v8  ;;  %321 = vmatpush1.bf16.msra.mxu1 %v320_v20 }
  0x43   :  { %p409_p0 = pnand %p408_p13, %p402_p10 }
 0x115   :  { %v166_v22 = vpop.f32.mrb[0].mxu0 }
 0x116   :  { %v167_v23 = vadd.f32 %v289_v21, %v166_v22  ;;  %v307_v24 = vpop.f32.mrb[1].mxu0 }
 0x118   :  { %333 = vtanh.f32 %v167_v23 }
 0x122   :  { %v334_v25 = vpop.eup %333 }
 0x123   :  { %173 = vst.msk [vmem:[#allocation3] sm:$0xff] %vm96_vm1, %v334_v25 }
 0x12a   :  { %v178_v26 = vld [vmem:[#allocation3] sm:$0xff] }
 0x12b   :  { %291 = vmatmul.mubr.msk.f32.vlgmr.msra.gmra.mrb[0].mxu1 %vm96_vm1, %v178_v26 }
 0x1fe   :  { %v257_v34 = vpop.f32.mrb[0].mxu1 }
 0x1ff   :  { %v262_v35 = vadd.f32 %v257_v34, %v69_v32  ;;  %v259_v36 = vpop.f32.mrb[1].mxu1 }
 0x200   :  { %v263_v37 = vadd.f32 %v259_v36, %v73_v33 }
 0x201   :  { %271 = vst [vmem:[#allocation10] sm:$0xff] %v262_v35 }
 0x202   :  { %272 = vst [vmem:[#allocation10 + $0x8] sm:$0xff] %v263_v37 }
 0x203   :  { %412 = shalt.err (!%p409_p0)
}
 0x204   :  { %s413_s12 = scalar_lea.hbm %s532_s5, 256 }
 0x205   :  { %p414_p1 = scmp.ne.s32.totalorder %s532_s5, %s413_s12  ;;  %p417_p2 = scmp.lt.u32.totalorder %s413_s12, %s532_s5 }
 0x207   :  { %p419_p3 = pnand %p417_p2, %p414_p1 }
 0x209   :  { %422 = shalt.err (!%p419_p3)
}
 0x20a   :  { %282 = dma.vmem_to_hbm [thread:$0]  %s280_s9, 256, %s532_s5, [#allocation6]  }
 0x20b   :  { %427 = dma.done.wait [#allocation6], 256  }
 0x20c   :  { %428 = vsyncadd [#allocation6], 4294967040 }
 0x20d   :  { %286 = vsyncpa [#allocation5], 1 }
 0x20e   :  { %287 = vsyncpa [#allocation8], 1 }
 0x20f   :  { %288 = vsyncpa [#allocation6], 1 }

</bundles_post_ra>
